<compile_context>
chip_gen: v7x
topology: tpu7x:2x2x1
jax: 0.10.0
libtpu: 0.0.40
codegen_flags: <defaults>
</compile_context>

<pallas_src>
import functools

import jax
import jax.numpy as jnp
from jax.experimental import pallas as pl
from jax.experimental.pallas import tpu as pltpu


def _round_up(n, m):
    return ((n + m - 1) // m) * m


def _cdiv(a, b):
    return (a + b - 1) // b


def _net_kernel(x_ref, w1_ref, b1_ref, w2_ref, b2_ref, o_ref):
    # FC1: K = s_dim is tiny, but the MXU handles it in the vector-extended
    # slot, keeping VALU/XLU free (per review item on the VPU branch).
    h = jnp.dot(x_ref[...], w1_ref[...], preferred_element_type=jnp.float32)
    h = jnp.maximum(h + b1_ref[...], 0.0)          # (tile_b, h_pad=128)
    # FC2: K = h_pad = 128 (lane-dense), N = a_pad = 8 (narrow output).
    y = jnp.dot(h, w2_ref[...], preferred_element_type=jnp.float32) + b2_ref[...]
    o_ref[...] = 4.0 * jnp.tanh(y) + 4.0           # (tile_b, a_pad=8)


def prepare_params(w1, b1, w2, b2):
    """Zero-pad parameters once, outside the per-call hot path.

    hidden -> multiple of 128 (lane-dense activation feeding the second MXU
    contraction); a_dim -> multiple of 8 (narrow but legal full-width output
    block).  Zero padding leaves the math on the real columns unchanged.
    """
    s_dim, hidden = w1.shape
    _, a_dim = w2.shape
    h_pad = _round_up(hidden, 128)
    a_pad = _round_up(a_dim, 8)
    w1_p = jnp.pad(w1, ((0, 0), (0, h_pad - hidden)))
    b1_p = jnp.pad(jnp.reshape(b1, (1, hidden)), ((0, 0), (0, h_pad - hidden)))
    w2_p = jnp.pad(w2, ((0, h_pad - hidden), (0, a_pad - a_dim)))
    b2_p = jnp.pad(jnp.reshape(b2, (1, a_dim)), ((0, 0), (0, a_pad - a_dim)))
    return w1_p, b1_p, w2_p, b2_p


def _choose_batch_tiling(B, max_tile_b):
    """Pick (tile_b, b_pad, n_tiles) with only a few rows of batch padding.

    Also guarantees >= 2 parallel grid steps when there is enough work, so the
    1-D "parallel" grid feeds both TensorCores on v7x.
    """
    b8 = _round_up(max(B, 1), 8)
    n_tiles = _cdiv(b8, max_tile_b)
    if n_tiles == 1 and b8 >= 512:      # >=256 rows per core: worth splitting
        n_tiles = 2
    tile_b = _round_up(_cdiv(b8, n_tiles), 8)
    b_pad = n_tiles * tile_b
    return tile_b, b_pad, n_tiles


@functools.partial(jax.jit, static_argnames=("a_dim", "max_tile_b"))
def net_forward(x, w1_p, b1_p, w2_p, b2_p, *, a_dim, max_tile_b=2048):
    """x: (B, s_dim) f32; padded params from prepare_params. Returns (B, a_dim)."""
    B, s_dim = x.shape
    h_pad = w1_p.shape[1]
    a_pad = w2_p.shape[1]

    tile_b, b_pad, n_tiles = _choose_batch_tiling(B, max_tile_b)
    x_p = x if b_pad == B else jnp.pad(x, ((0, b_pad - B), (0, 0)))

    out_padded = pl.pallas_call(
        _net_kernel,
        out_shape=jax.ShapeDtypeStruct((b_pad, a_pad), jnp.float32),
        grid=(n_tiles,),
        in_specs=[
            pl.BlockSpec((tile_b, s_dim), lambda i: (i, 0)),  # x: batch-tiled
            pl.BlockSpec((s_dim, h_pad), lambda i: (0, 0)),   # W1: resident
            pl.BlockSpec((1, h_pad), lambda i: (0, 0)),       # b1: resident
            pl.BlockSpec((h_pad, a_pad), lambda i: (0, 0)),   # W2: resident
            pl.BlockSpec((1, a_pad), lambda i: (0, 0)),       # b2: resident
        ],
        out_specs=pl.BlockSpec((tile_b, a_pad), lambda i: (i, 0)),
        compiler_params=pltpu.CompilerParams(
            dimension_semantics=("parallel",)),
    )(x_p, w1_p, b1_p, w2_p, b2_p)

    if b_pad == B and a_pad == a_dim:
        return out_padded
    return out_padded[:B, :a_dim]


def init_params(key, s_dim, a_dim, hidden=30):
    k1, k2, k3, k4 = jax.random.split(key, 4)
    # PyTorch: weight.data.normal_(0, 0.1); biases keep nn.Linear default init
    # (uniform(-1/sqrt(fan_in), 1/sqrt(fan_in))).  Weights stored as
    # [in_features, out_features] so the kernel computes x @ W + b.
    w1 = 0.1 * jax.random.normal(k1, (s_dim, hidden), dtype=jnp.float32)
    b1 = jax.random.uniform(
        k2, (1, hidden), dtype=jnp.float32,
        minval=-1.0 / jnp.sqrt(s_dim), maxval=1.0 / jnp.sqrt(s_dim))
    w2 = 0.1 * jax.random.normal(k3, (hidden, a_dim), dtype=jnp.float32)
    b2 = jax.random.uniform(
        k4, (1, a_dim), dtype=jnp.float32,
        minval=-1.0 / jnp.sqrt(hidden), maxval=1.0 / jnp.sqrt(hidden))
    return w1, b1, w2, b2


def _reference(x, w1, b1, w2, b2):
    h = jnp.maximum(x @ w1 + b1, 0.0)
    return 4.0 * jnp.tanh(h @ w2 + b2) + 4.0


if __name__ == "__main__":
    key = jax.random.PRNGKey(0)
    s_dim, a_dim, hidden = 4, 3, 30
    kx, kp, kb = jax.random.split(key, 3)
    w1, b1, w2, b2 = init_params(kp, s_dim, a_dim, hidden)
    # Parameters padded once, outside the per-call path (review item).
    w1_p, b1_p, w2_p, b2_p = prepare_params(w1, b1, w2, b2)

    # Small case matching the module's typical DQN usage (batch of 2 states).
    x = jax.random.normal(kx, (2, s_dim), dtype=jnp.float32)
    out = net_forward(x, w1_p, b1_p, w2_p, b2_p, a_dim=a_dim)
    jax.block_until_ready(out)
    ref = _reference(x, w1, b1, w2, b2)
    assert out.shape == (2, a_dim)
    assert jnp.allclose(out, ref, atol=1e-5, rtol=1e-5)

    # Larger, non-multiple batch exercises the multi-tile parallel grid
    # (>= 2 steps for v7x megacore) and the minimal-batch-padding path
    # (B=1041 now pads to 1056, not 2048).
    xb = jax.random.normal(kb, (1024 + 17, s_dim), dtype=jnp.float32)
    out_b = net_forward(xb, w1_p, b1_p, w2_p, b2_p, a_dim=a_dim)
    jax.block_until_ready(out_b)
    ref_b = _reference(xb, w1, b1, w2, b2)
    assert out_b.shape == (1024 + 17, a_dim)
    assert jnp.allclose(out_b, ref_b, atol=1e-5, rtol=1e-5)

    print("KERNEL_OK")
</pallas_src>

<mosaic_0001>
module attributes {stable_mosaic.version = 11 : i64} {
  func.func @_net_kernel(%arg0: i32, %arg1: memref<8x4xf32, #tpu.memory_space<vmem>>, %arg2: memref<4x128xf32, #tpu.memory_space<vmem>>, %arg3: memref<1x128xf32, #tpu.memory_space<vmem>>, %arg4: memref<128x8xf32, #tpu.memory_space<vmem>>, %arg5: memref<1x8xf32, #tpu.memory_space<vmem>>, %arg6: memref<8x8xf32, #tpu.memory_space<vmem>>) attributes {dimension_semantics = [#tpu.dimension_semantics<parallel>], iteration_bounds = array<i64: 1>, scalar_prefetch = 0 : i64, scratch_operands = 0 : i64, tpu.core_type = #tpu.core_type<tc>, window_params = [{transform_indices = @transform_0, window_bounds = array<i64: 8, 4>}, {pipeline_mode = #tpu.pipeline_mode<synchronous>, transform_indices = @transform_1, window_bounds = array<i64: 4, 128>}, {pipeline_mode = #tpu.pipeline_mode<synchronous>, transform_indices = @transform_2, window_bounds = array<i64: 1, 128>}, {pipeline_mode = #tpu.pipeline_mode<synchronous>, transform_indices = @transform_3, window_bounds = array<i64: 128, 8>}, {pipeline_mode = #tpu.pipeline_mode<synchronous>, transform_indices = @transform_4, window_bounds = array<i64: 1, 8>}, {transform_indices = @transform_5, window_bounds = array<i64: 8, 8>}]} {
    %c0 = arith.constant 0 : index
    %c0_0 = arith.constant 0 : index
    %0 = vector.load %arg1[%c0, %c0_0] : memref<8x4xf32, #tpu.memory_space<vmem>>, vector<8x4xf32>
    %c0_1 = arith.constant 0 : index
    %c0_2 = arith.constant 0 : index
    %1 = vector.load %arg2[%c0_1, %c0_2] : memref<4x128xf32, #tpu.memory_space<vmem>>, vector<4x128xf32>
    %cst = arith.constant dense<0.000000e+00> : vector<8x128xf32>
    %2 = tpu.matmul %0, %1, %cst {dimension_numbers = #tpu.dot_dimension_numbers<[1], [0], [0], [1], [0, 0, 1, 1], [], []>} : vector<8x4xf32>, vector<4x128xf32>, vector<8x128xf32> -> vector<8x128xf32>
    %c0_3 = arith.constant 0 : index
    %c0_4 = arith.constant 0 : index
    %3 = vector.load %arg3[%c0_3, %c0_4] : memref<1x128xf32, #tpu.memory_space<vmem>>, vector<1x128xf32>
    %4 = vector.broadcast %3 : vector<1x128xf32> to vector<8x128xf32>
    %5 = arith.addf %2, %4 : vector<8x128xf32>
    %cst_5 = arith.constant 0.000000e+00 : f32
    %6 = vector.broadcast %cst_5 : f32 to vector<8x128xf32>
    %7 = arith.maximumf %5, %6 : vector<8x128xf32>
    %c0_6 = arith.constant 0 : index
    %c0_7 = arith.constant 0 : index
    %8 = vector.load %arg4[%c0_6, %c0_7] : memref<128x8xf32, #tpu.memory_space<vmem>>, vector<128x8xf32>
    %cst_8 = arith.constant dense<0.000000e+00> : vector<8x8xf32>
    %9 = tpu.matmul %7, %8, %cst_8 {dimension_numbers = #tpu.dot_dimension_numbers<[1], [0], [0], [1], [0, 0, 1, 1], [], []>} : vector<8x128xf32>, vector<128x8xf32>, vector<8x8xf32> -> vector<8x8xf32>
    %c0_9 = arith.constant 0 : index
    %c0_10 = arith.constant 0 : index
    %10 = vector.load %arg5[%c0_9, %c0_10] : memref<1x8xf32, #tpu.memory_space<vmem>>, vector<1x8xf32>
    %11 = vector.broadcast %10 : vector<1x8xf32> to vector<8x8xf32>
    %12 = arith.addf %9, %11 : vector<8x8xf32>
    %13 = math.tanh %12 : vector<8x8xf32>
    %cst_11 = arith.constant 4.000000e+00 : f32
    %14 = vector.broadcast %cst_11 : f32 to vector<8x8xf32>
    %15 = arith.mulf %14, %13 : vector<8x8xf32>
    %cst_12 = arith.constant 4.000000e+00 : f32
    %16 = vector.broadcast %cst_12 : f32 to vector<8x8xf32>
    %17 = arith.addf %15, %16 : vector<8x8xf32>
    %c0_13 = arith.constant 0 : index
    %c0_14 = arith.constant 0 : index
    %18 = vector.load %arg6[%c0_13, %c0_14] : memref<8x8xf32, #tpu.memory_space<vmem>>, vector<8x8xf32>
    tpu.vector_store %arg6[%c0_13, %c0_14], %17 {strides = array<i32>} : memref<8x8xf32, #tpu.memory_space<vmem>>, vector<8x8xf32>,
    return
  }
  func.func @transform_0(%arg0: i32) -> (i32, i32) {
    %c0_i32 = arith.constant 0 : i32
    %c0_i32_0 = arith.constant 0 : i32
    return %arg0, %c0_i32 : i32, i32
  }
  func.func @transform_1(%arg0: i32) -> (i32, i32) {
    %c0_i32 = arith.constant 0 : i32
    %c0_i32_0 = arith.constant 0 : i32
    %c0_i32_1 = arith.constant 0 : i32
    return %c0_i32, %c0_i32_0 : i32, i32
  }
  func.func @transform_2(%arg0: i32) -> (i32, i32) {
    %c0_i32 = arith.constant 0 : i32
    %c0_i32_0 = arith.constant 0 : i32
    %c0_i32_1 = arith.constant 0 : i32
    return %c0_i32, %c0_i32_0 : i32, i32
  }
  func.func @transform_3(%arg0: i32) -> (i32, i32) {
    %c0_i32 = arith.constant 0 : i32
    %c0_i32_0 = arith.constant 0 : i32
    %c0_i32_1 = arith.constant 0 : i32
    return %c0_i32, %c0_i32_0 : i32, i32
  }
  func.func @transform_4(%arg0: i32) -> (i32, i32) {
    %c0_i32 = arith.constant 0 : i32
    %c0_i32_0 = arith.constant 0 : i32
    %c0_i32_1 = arith.constant 0 : i32
    return %c0_i32, %c0_i32_0 : i32, i32
  }
  func.func @transform_5(%arg0: i32) -> (i32, i32) {
    %c0_i32 = arith.constant 0 : i32
    %c0_i32_0 = arith.constant 0 : i32
    return %arg0, %c0_i32 : i32, i32
  }
}

</mosaic_0001>

<bundles_post_ra>
// kernel: net_forward.1
= control target key start
LH: loop header
LB: loop body
LE: loop exit
PB: predicated region body
PF: predicated region fallthrough
CT: control target
= control target key end

     0   :  { %vm33_vm0 = vcmask 1043456   ;;  %vm29_vm1 = vcmask 31744   ;;  %v302_v0 = vmov 0.0   ;;  %vm303_vm2 = vmmov 0   ;;  %s398_s1 = inlined_call_operand.vmem [shape: f32[4,128], index: 1, kind: input, shape index: {}]   ;;  %s399_s0 = inlined_call_operand.vmem [shape: f32[8,4], index: 0, kind: input, shape index: {}]   ;;  %s400_s3 = inlined_call_operand.vmem [shape: f32[128,8], index: 3, kind: input, shape index: {}]   ;;  %s401_s2 = inlined_call_operand.vmem [shape: f32[1,128], index: 2, kind: input, shape index: {}]   ;;  %s402_s4 = inlined_call_operand.vmem [shape: f32[1,8], index: 4, kind: input, shape index: {}]   ;;  %s403_s5 = inlined_call_operand.vmem [shape: f32[8,8], index: 5, kind: output, shape index: {}]  }
   0x1   :  { %233 = vmatprep.subr.mxu0 %v302_v0  ;;  %v21_v1 = vld [vmem:[%s398_s1] sm:$0xf]  ;;  %235 = vmatprep.mubr.msk.f32.mxu0 %vm303_vm2, %v302_v0  ;;  %v304_v4 = vmov 0.0|0.0   ;;  %v109_v5 = vld [vmem:[%s400_s3 + $0x8] sm:$0xff]  ;;  %v110_v6 = vld [vmem:[%s400_s3 + $0x10] sm:$0xff]  ;;  %vm204_vm3 = vcmask 64512  }
   0x2   :  { %v20_v2 = vld [vmem:[%s399_s0] sm:$0xff]  ;;  %234 = vmatpush3.msk.msra.mxu0 %vm33_vm0, %v21_v1  ;;  %273 = vmatprep.subr.bf16.mxu1 %v304_v4  ;;  %v111_v7 = vld [vmem:[%s400_s3 + $0x18] sm:$0xff]  ;;  %v113_v11 = vld [vmem:[%s400_s3 + $0x28] sm:$0xff] }
   0x3   :  { %v108_v3 = vld [vmem:[%s400_s3] sm:$0xff]  ;;  %236 = vmatmul.mubr.msk.f32.vlgmr.msra.gmra.mrb[0].mxu0 %vm29_vm1, %v20_v2  ;;  %270 = vmatprep.mubr.msk.f32.mxu1 %vm303_vm2, %v302_v0  ;;  %v277_v9 = vpack.c.bf16 %v111_v7, %v110_v6  ;;  %v114_v13 = vld [vmem:[%s400_s3 + $0x30] sm:$0xff]  ;;  %v115_v14 = vld [vmem:[%s400_s3 + $0x38] sm:$0xff] }
   0x4   :  { %v274_v8 = vpack.c.bf16 %v109_v5, %v108_v3  ;;  %v112_v10 = vld [vmem:[%s400_s3 + $0x20] sm:$0xff]  ;;  %v283_v15 = vpack.c.bf16 %v115_v14, %v114_v13  ;;  %v117_v17 = vld [vmem:[%s400_s3 + $0x48] sm:$0xff]  ;;  %v118_v19 = vld [vmem:[%s400_s3 + $0x50] sm:$0xff] }
   0x5   :  { %v280_v12 = vpack.c.bf16 %v113_v11, %v112_v10  ;;  %v116_v16 = vld [vmem:[%s400_s3 + $0x40] sm:$0xff]  ;;  %v119_v20 = vld [vmem:[%s400_s3 + $0x58] sm:$0xff]  ;;  %v121_v23 = vld [vmem:[%s400_s3 + $0x68] sm:$0xff] }
   0x6   :  { %275 = vmatpush3.bf16.msra.mxu1 %v274_v8  ;;  %v286_v18 = vpack.c.bf16 %v117_v17, %v116_v16  ;;  %v289_v21 = vpack.c.bf16 %v119_v20, %v118_v19  ;;  %v120_v22 = vld [vmem:[%s400_s3 + $0x60] sm:$0xff]  ;;  %v122_v25 = vld [vmem:[%s400_s3 + $0x70] sm:$0xff]  ;;  %v123_v26 = vld [vmem:[%s400_s3 + $0x78] sm:$0xff] }
   0x7   :  { %276 = vmatprep.subr.bf16.mxu1 %v304_v4  ;;  %v292_v24 = vpack.c.bf16 %v121_v23, %v120_v22  ;;  %v295_v27 = vpack.c.bf16 %v123_v26, %v122_v25  ;;  %v210_v28 = vld [vmem:[%s401_s2] ss:$0 sm:$0xff] }
   0x8   :  { %v213_v33 = vld [vmem:[%s402_s4] ss:$0 sm:$0xff] }
   0xa   :  { %278 = vmatpush3.bf16.msra.mxu1 %v277_v9 }
   0xb   :  { %279 = vmatprep.subr.bf16.mxu1 %v304_v4 }
   0xe   :  { %281 = vmatpush3.bf16.msra.mxu1 %v280_v12 }
   0xf   :  { %282 = vmatprep.subr.bf16.mxu1 %v304_v4 }
  0x12   :  { %284 = vmatpush3.bf16.msra.mxu1 %v283_v15 }
  0x13   :  { %285 = vmatprep.subr.bf16.mxu1 %v304_v4 }
  0x16   :  { %287 = vmatpush3.bf16.msra.mxu1 %v286_v18 }
  0x17   :  { %288 = vmatprep.subr.bf16.mxu1 %v304_v4 }
  0x1a   :  { %290 = vmatpush3.bf16.msra.mxu1 %v289_v21 }
  0x1b   :  { %291 = vmatprep.subr.bf16.mxu1 %v304_v4 }
  0x1e   :  { %293 = vmatpush3.bf16.msra.mxu1 %v292_v24 }
  0x1f   :  { %294 = vmatprep.subr.bf16.mxu1 %v304_v4 }
  0x22   :  { %296 = vmatpush3.bf16.msra.mxu1 %v295_v27 }
  0xd6   :  { %v103_v29 = vpop.f32.mrb[0].mxu0 }
  0xd7   :  { %v104_v30 = vadd.f32 %v210_v28, %v103_v29  ;;  %v237_v31 = vpop.f32.mrb[1].mxu0 }
  0xd9   :  { %v107_v32 = vmax.f32 %v104_v30, 0.0 }
  0xdb   :  { %271 = vmatmul.mubr.f32.vlgmr.msra.gmra.mrb[0].mxu1 %v107_v32 }
 0x1ae   :  { %v197_v34 = vpop.f32.mrb[0].mxu1 }
 0x1af   :  { %v198_v35 = vadd.f32 %v213_v33, %v197_v34  ;;  %v272_v36 = vpop.f32.mrb[1].mxu1 }
 0x1b1   :  { %300 = vtanh.f32 %v198_v35 }
 0x1bb   :  { %v301_v37 = vpop.eup %300 }
 0x1bc   :  { %v202_v38 = vmul.f32 4.0, %v301_v37 }
 0x1be   :  { %v203_v39 = vadd.f32 4.0, %v202_v38 }
 0x1c0   :  { %205 = vst.msk [vmem:[%s403_s5] sm:$0xff] %vm204_vm3, %v203_v39 }

</bundles_post_ra>
